<compile_context>
chip_gen: v7x
topology: tpu7x:2x2x1
jax: 0.10.0
libtpu: 0.0.40
codegen_flags: <defaults>
</compile_context>

<pallas_src>
import jax
import jax.numpy as jnp
from jax.experimental import pallas as pl
from jax.experimental.pallas import tpu as pltpu


# ---------------------------------------------------------------------------
# Tile-selection helpers (avoid wrapper-side activation padding when possible)
# ---------------------------------------------------------------------------
def _round_up(v, m):
    return ((v + m - 1) // m) * m


def _pick_tile(dim, max_tile, align):
    """Largest multiple of `align` <= max_tile that divides `dim`.

    `dim` must itself be a multiple of `align`.
    """
    t = min(max_tile, dim)
    t = (t // align) * align
    while t > align and dim % t:
        t -= align
    return t


def _m_axis(B, max_tm):
    """(Bp, tm, padded) for the batch axis; avoids padding x when possible."""
    if B % 8 == 0:
        tm = _pick_tile(B, max_tm, 8)
        if tm >= 64 or B <= max_tm:
            return B, tm, False
    if B <= max_tm:
        return B, B, False              # full-extent block, no (8,.) constraint
    # Awkward batch (not 8-aligned / no decent divisor): minimal pad.
    # TODO(synk): mask the last tile's store instead of padding the activation.
    tm = min(max_tm, 256)
    return _round_up(B, tm), tm, True


def _k_axis(D, max_tk):
    """(Dp, tk, padded) for the reduction axis; avoids padding x when possible."""
    if D % 128 == 0:
        return D, _pick_tile(D, max_tk, 128), False
    if D <= 2048:
        return D, D, False              # single full-extent K block, no pad
    # TODO(synk): in-kernel K-tail masking (iota vs true D) to avoid this pad.
    Dp = _round_up(D, 128)
    return Dp, _pick_tile(Dp, max_tk, 128), True


# ---------------------------------------------------------------------------
# Path 1: output_dim == 1  (VPU multiply + lane reduce, bias scalar in SMEM)
# ---------------------------------------------------------------------------
def _linear_o1_kernel(x_ref, w_ref, b_ref, o_ref, acc_ref):
    k = pl.program_id(1)

    @pl.when(k == 0)
    def _():
        acc_ref[...] = jnp.zeros_like(acc_ref)

    # Upcast before the reduction so bf16 inputs still accumulate in f32.
    prod = x_ref[...].astype(jnp.float32) * w_ref[...].astype(jnp.float32)
    acc_ref[...] += jnp.sum(prod, axis=-1, keepdims=True)

    @pl.when(k == pl.num_programs(1) - 1)
    def _():
        o_ref[...] = (acc_ref[...] + b_ref[0]).astype(o_ref.dtype)


def _linear_o1(x, weight, bias, *, max_tm=512, max_tk=512):
    B, D = x.shape
    Bp, tm, pad_b = _m_axis(B, max_tm)
    Dp, tk, pad_d = _k_axis(D, max_tk)

    if pad_b or pad_d:
        x = jnp.pad(x, ((0, Bp - B), (0, Dp - D)))
    w = jnp.pad(weight, ((0, 0), (0, Dp - D))) if Dp != D else weight

    grid = (Bp // tm, Dp // tk)

    # TODO(synk): for many regression heads, batch them along the lane axis so
    # the output is lane-dense instead of a (tm, 1) masked store per head.
    out = pl.pallas_call(
        _linear_o1_kernel,
        out_shape=jax.ShapeDtypeStruct((Bp, 1), x.dtype),
        grid_spec=pltpu.PrefetchScalarGridSpec(
            num_scalar_prefetch=0,
            grid=grid,
            in_specs=[
                pl.BlockSpec((tm, tk), lambda i, k: (i, k)),          # x
                pl.BlockSpec((1, tk), lambda i, k: (0, k)),           # weight (1, D)
                pl.BlockSpec(memory_space=pltpu.MemorySpace.SMEM),    # scalar bias
            ],
            out_specs=pl.BlockSpec((tm, 1), lambda i, k: (i, 0)),
            scratch_shapes=[pltpu.VMEM((tm, 1), jnp.float32)],
        ),
        compiler_params=pltpu.CompilerParams(
            dimension_semantics=("parallel", "arbitrary"),
            vmem_limit_bytes=48 * 1024 * 1024),
    )(x, w, bias)

    return out[:B] if Bp != B else out


# ---------------------------------------------------------------------------
# Path 2: general output_dim — tiled MXU matmul with f32 accumulator scratch
# ---------------------------------------------------------------------------
def _linear_tiled_kernel(x_ref, w_ref, b_ref, o_ref, acc_ref):
    k = pl.program_id(2)

    @pl.when(k == 0)
    def _():
        acc_ref[...] = jnp.zeros_like(acc_ref)

    # Plain (tm, tk) @ (tk, tn) MXU contraction (weight pre-transposed once in
    # the wrapper) — no per-k-step transpose in the vector-extended slot.
    acc_ref[...] += jnp.dot(x_ref[...], w_ref[...],
                            preferred_element_type=jnp.float32)

    @pl.when(k == pl.num_programs(2) - 1)
    def _():
        o_ref[...] = (acc_ref[...] + b_ref[...]).astype(o_ref.dtype)


def _linear_tiled(x, weight, bias, *, max_tm=512, max_tn=512, max_tk=512):
    B, D = x.shape
    O = weight.shape[0]

    Bp, tm, pad_b = _m_axis(B, max_tm)
    Dp, tk, pad_d = _k_axis(D, max_tk)
    Op = _round_up(O, 128)
    tn = _pick_tile(Op, max_tn, 128)

    if pad_b or pad_d:
        x = jnp.pad(x, ((0, Bp - B), (0, Dp - D)))

    # One-time transpose of the small (O, D) weight into MXU-friendly (D, O).
    w_t = weight.T
    if (Dp, Op) != (D, O):
        w_t = jnp.pad(w_t, ((0, Dp - D), (0, Op - O)))
    b2 = (jnp.pad(bias, (0, Op - O)) if Op != O else bias).reshape(1, Op)

    grid = (Bp // tm, Op // tn, Dp // tk)

    itemsize = jnp.dtype(x.dtype).itemsize
    flops = 2 * Bp * Dp * Op
    bytes_accessed = itemsize * (Bp * Dp * (Op // tn)      # x, re-read per j
                                 + Dp * Op * (Bp // tm)    # weight, per i
                                 + Bp * Op + Op)           # output + bias

    out = pl.pallas_call(
        _linear_tiled_kernel,
        out_shape=jax.ShapeDtypeStruct((Bp, Op), x.dtype),
        grid_spec=pltpu.PrefetchScalarGridSpec(
            num_scalar_prefetch=0,
            grid=grid,
            in_specs=[
                pl.BlockSpec((tm, tk), lambda i, j, k: (i, k)),   # x
                pl.BlockSpec((tk, tn), lambda i, j, k: (k, j)),   # weight (D, O)
                pl.BlockSpec((1, tn), lambda i, j, k: (0, j)),    # bias row
            ],
            out_specs=pl.BlockSpec((tm, tn), lambda i, j, k: (i, j)),
            scratch_shapes=[pltpu.VMEM((tm, tn), jnp.float32)],
        ),
        compiler_params=pltpu.CompilerParams(
            dimension_semantics=("parallel", "parallel", "arbitrary"),
            vmem_limit_bytes=48 * 1024 * 1024),
        cost_estimate=pl.CostEstimate(flops=flops, transcendentals=0,
                                      bytes_accessed=int(bytes_accessed)),
    )(x, w_t, b2)

    if (Bp, Op) != (B, O):
        out = out[:B, :O]
    return out


def multiple_linear_regression(x, weight, bias):
    """Forward of torch.nn.Linear(input_dim, output_dim): y = x @ W.T + b.

    x: (B, D); weight: (O, D) torch layout; bias: (O,) -> returns (B, O).
    """
    if weight.shape[0] == 1:
        return _linear_o1(x, weight, bias)
    return _linear_tiled(x, weight, bias)


if __name__ == "__main__":
    key = jax.random.PRNGKey(0)

    # --- Module default shapes: batch=8, input_dim=32, output_dim=1 ---------
    B, D, O = 8, 32, 1
    kx, kw, kb, k2, k3, k4 = jax.random.split(key, 6)
    x = jax.random.normal(kx, (B, D), dtype=jnp.float32)
    bound = 1.0 / jnp.sqrt(jnp.float32(D))
    weight = jax.random.uniform(kw, (O, D), minval=-bound, maxval=bound,
                                dtype=jnp.float32)
    bias = jax.random.uniform(kb, (O,), minval=-bound, maxval=bound,
                              dtype=jnp.float32)

    y = jax.block_until_ready(multiple_linear_regression(x, weight, bias))
    y_ref = x @ weight.T + bias
    assert y.shape == (B, O)
    assert jnp.allclose(y, y_ref, atol=1e-5, rtol=1e-5)

    # --- Tiled path: unaligned D (full-extent K block, no x pad), padded O ---
    B2, D2, O2 = 384, 520, 192
    kx2, kw2, kb2 = jax.random.split(k2, 3)
    x2 = jax.random.normal(kx2, (B2, D2), dtype=jnp.float32)
    w2 = jax.random.normal(kw2, (O2, D2), dtype=jnp.float32) * 0.05
    b2 = jax.random.normal(kb2, (O2,), dtype=jnp.float32)
    y2 = jax.block_until_ready(multiple_linear_regression(x2, w2, b2))
    assert y2.shape == (B2, O2)
    assert jnp.allclose(y2, x2 @ w2.T + b2, atol=2e-3, rtol=2e-3)

    # --- Tiled path: multi-step K accumulation (aligned, no pad, no slice) ---
    B3, D3, O3 = 128, 1280, 256
    kx3, kw3, kb3 = jax.random.split(k3, 3)
    x3 = jax.random.normal(kx3, (B3, D3), dtype=jnp.float32)
    w3 = jax.random.normal(kw3, (O3, D3), dtype=jnp.float32) * 0.05
    b3 = jax.random.normal(kb3, (O3,), dtype=jnp.float32)
    y3 = jax.block_until_ready(multiple_linear_regression(x3, w3, b3))
    assert y3.shape == (B3, O3)
    assert jnp.allclose(y3, x3 @ w3.T + b3, atol=2e-3, rtol=2e-3)

    # --- O==1 path with multi-step K accumulation ----------------------------
    B4, D4 = 64, 1280
    kx4, kw4, kb4 = jax.random.split(k4, 3)
    x4 = jax.random.normal(kx4, (B4, D4), dtype=jnp.float32)
    bound4 = 1.0 / jnp.sqrt(jnp.float32(D4))
    w4 = jax.random.uniform(kw4, (1, D4), minval=-bound4, maxval=bound4,
                            dtype=jnp.float32)
    b4 = jax.random.uniform(kb4, (1,), minval=-bound4, maxval=bound4,
                            dtype=jnp.float32)
    y4 = jax.block_until_ready(multiple_linear_regression(x4, w4, b4))
    assert y4.shape == (B4, 1)
    assert jnp.allclose(y4, x4 @ w4.T + b4, atol=1e-4, rtol=1e-4)

    print("KERNEL_OK")
</pallas_src>

<mosaic_0001>
module attributes {stable_mosaic.version = 11 : i64} {
  func.func @_linear_o1_kernel(%arg0: i32, %arg1: i32, %arg2: memref<8x32xf32, #tpu.memory_space<vmem>>, %arg3: memref<1x32xf32, #tpu.memory_space<vmem>>, %arg4: memref<1xf32, #tpu.memory_space<smem>>, %arg5: memref<8x1xf32, #tpu.memory_space<vmem>>, %arg6: memref<8x1xf32, #tpu.memory_space<vmem>>) attributes {dimension_semantics = [#tpu.dimension_semantics<parallel>, #tpu.dimension_semantics<arbitrary>], iteration_bounds = array<i64: 1, 1>, scalar_prefetch = 0 : i64, scratch_operands = 1 : i64, tpu.core_type = #tpu.core_type<tc>, window_params = [{transform_indices = @transform_0, window_bounds = array<i64: 8, 32>}, {transform_indices = @transform_1, window_bounds = array<i64: 1, 32>}, {transform_indices = @transform_2, window_bounds = array<i64: 1>}, {transform_indices = @transform_3, window_bounds = array<i64: 8, 1>}]} {
    %c0_i32 = arith.constant 0 : i32
    %0 = arith.cmpi eq, %arg1, %c0_i32 : i32
    %1 = arith.extui %0 : i1 to i32
    %c0_i32_0 = arith.constant 0 : i32
    %2 = arith.cmpi ne, %1, %c0_i32_0 : i32
    scf.if %2 {
      %cst_10 = arith.constant 0.000000e+00 : f32
      %15 = vector.broadcast %cst_10 : f32 to vector<8x1xf32>
      %c0_11 = arith.constant 0 : index
      %c0_12 = arith.constant 0 : index
      %16 = vector.load %arg6[%c0_11, %c0_12] : memref<8x1xf32, #tpu.memory_space<vmem>>, vector<8x1xf32>
      tpu.vector_store %arg6[%c0_11, %c0_12], %15 {strides = array<i32>} : memref<8x1xf32, #tpu.memory_space<vmem>>, vector<8x1xf32>,
    } else {
    }
    %c0 = arith.constant 0 : index
    %c0_1 = arith.constant 0 : index
    %3 = vector.load %arg2[%c0, %c0_1] : memref<8x32xf32, #tpu.memory_space<vmem>>, vector<8x32xf32>
    %c0_2 = arith.constant 0 : index
    %c0_3 = arith.constant 0 : index
    %4 = vector.load %arg3[%c0_2, %c0_3] : memref<1x32xf32, #tpu.memory_space<vmem>>, vector<1x32xf32>
    %5 = vector.broadcast %4 : vector<1x32xf32> to vector<8x32xf32>
    %6 = arith.mulf %3, %5 : vector<8x32xf32>
    %c0_4 = arith.constant 0 : index
    %c0_5 = arith.constant 0 : index
    %7 = vector.load %arg6[%c0_4, %c0_5] : memref<8x1xf32, #tpu.memory_space<vmem>>, vector<8x1xf32>
    %cst = arith.constant dense<0.000000e+00> : vector<8xf32>
    %8 = vector.multi_reduction <add>, %6, %cst [1] : vector<8x32xf32> to vector<8xf32>
    %9 = vector.shape_cast %8 : vector<8xf32> to vector<8x1xf32>
    %10 = arith.addf %7, %9 : vector<8x1xf32>
    %c0_6 = arith.constant 0 : index
    %c0_7 = arith.constant 0 : index
    %11 = vector.load %arg6[%c0_6, %c0_7] : memref<8x1xf32, #tpu.memory_space<vmem>>, vector<8x1xf32>
    tpu.vector_store %arg6[%c0_6, %c0_7], %10 {strides = array<i32>} : memref<8x1xf32, #tpu.memory_space<vmem>>, vector<8x1xf32>,
    %c0_i32_8 = arith.constant 0 : i32
    %12 = arith.cmpi eq, %arg1, %c0_i32_8 : i32
    %13 = arith.extui %12 : i1 to i32
    %c0_i32_9 = arith.constant 0 : i32
    %14 = arith.cmpi ne, %13, %c0_i32_9 : i32
    scf.if %14 {
      %c0_10 = arith.constant 0 : index
      %c0_11 = arith.constant 0 : index
      %15 = vector.load %arg6[%c0_10, %c0_11] : memref<8x1xf32, #tpu.memory_space<vmem>>, vector<8x1xf32>
      %c0_12 = arith.constant 0 : index
      %16 = memref.load %arg4[%c0_12] : memref<1xf32, #tpu.memory_space<smem>>
      %17 = vector.broadcast %16 : f32 to vector<8x1xf32>
      %18 = arith.addf %15, %17 : vector<8x1xf32>
      %c0_13 = arith.constant 0 : index
      %c0_14 = arith.constant 0 : index
      %19 = vector.load %arg5[%c0_13, %c0_14] : memref<8x1xf32, #tpu.memory_space<vmem>>, vector<8x1xf32>
      tpu.vector_store %arg5[%c0_13, %c0_14], %18 {strides = array<i32>} : memref<8x1xf32, #tpu.memory_space<vmem>>, vector<8x1xf32>,
    } else {
    }
    return
  }
  func.func @transform_0(%arg0: i32, %arg1: i32) -> (i32, i32) {
    %c0_i32 = arith.constant 0 : i32
    return %arg0, %arg1 : i32, i32
  }
  func.func @transform_1(%arg0: i32, %arg1: i32) -> (i32, i32) {
    %c0_i32 = arith.constant 0 : i32
    %c0_i32_0 = arith.constant 0 : i32
    return %c0_i32, %arg1 : i32, i32
  }
  func.func @transform_2(%arg0: i32, %arg1: i32) -> i32 {
    %c0_i32 = arith.constant 0 : i32
    %c0_i32_0 = arith.constant 0 : i32
    return %c0_i32 : i32
  }
  func.func @transform_3(%arg0: i32, %arg1: i32) -> (i32, i32) {
    %c0_i32 = arith.constant 0 : i32
    %c0_i32_0 = arith.constant 0 : i32
    return %arg0, %c0_i32 : i32, i32
  }
}

</mosaic_0001>

<bundles_post_ra>
// kernel: tpu_custom_call.1
= control target key start
LH: loop header
LB: loop body
LE: loop exit
PB: predicated region body
PF: predicated region fallthrough
CT: control target
= control target key end

     0   :  { %9 = vsyncpa [#allocation5], 0  ;;  %s90_s12 = smov [#allocation4]   ;;  %s136_s0 = inlined_call_operand.hbm [shape: f32[8,32], index: 0, kind: input, shape index: {}]   ;;  %s137_s1 = inlined_call_operand.vmem [shape: f32[1,32], index: 1, kind: input, shape index: {}]   ;;  %s138_s2 = inlined_call_operand.<no memory space> [shape: f32[1], index: 2, kind: input, shape index: {}]   ;;  %s139_s3 = inlined_call_operand.vmem [shape: f32[8,1], index: 3, kind: output, shape index: {}]  }
   0x1   :  { %s16_s13 = sshll.u32 %s90_s12, 4  ;;  %s66_s16 = scalar_lea.hbm %s136_s0, 128  ;;  %s17_s13 = int_to_ptr.vmem [resolvable:$true] %s16_s13 }
   0x2   :  { %p67_p0 = scmp.ne.s32.totalorder %s136_s0, %s66_s16  ;;  %p70_p1 = scmp.lt.u32.totalorder %s66_s16, %s136_s0 }
   0x4   :  { %p72_p2 = pnand %p70_p1, %p67_p0 }
   0x6   :  { %75 = shalt.err (!%p72_p2)
}
   0x7   :  { %s76_s21 = scalar_lea.vmem %s17_s13, 128  ;;  %p81_p4 = scmp.lt.s32.totalorder %s17_s13, %s17_s13 }
   0x8   :  { %p77_p3 = scmp.ne.s32.totalorder %s17_s13, %s76_s21  ;;  %p82_p5 = scmp.lt.s32.totalorder %s76_s21, %s76_s21 }
   0xa   :  { %p83_p6 = por %p82_p5, %p81_p4 }
   0xc   :  { %p84_p7 = pnand %p83_p6, %p77_p3 }
   0xe   :  { %87 = shalt.err (!%p84_p7)
}
   0xf   :  { %19 = dma.hbm_to_vmem [thread:$0]  %s136_s0, 128, %s17_s13, [#allocation5]  }
  0x10   :  { %88 = dma.done.wait [#allocation5], 128  }
  0x11   :  { %89 = vsyncadd [#allocation5], 4294967168  ;;  %vm31_vm0 = vcmask 7168   ;;  %v91_v0 = vmov 0.0   ;;  %v33_v1 = vld [vmem:[#allocation4] sm:$0xff]  ;;  %vm43_vm1 = vcmask 261120   ;;  %v55_v8 = vstv %s138_s2 }
  0x12   :  { %32 = vst.msk [vmem:[#allocation2] sm:$0xff] %vm31_vm0, %v91_v0  ;;  %v63_v2 = vld [vmem:[%s137_s1] ss:$0 sm:$0xff] }
  0x13   :  { %v41_v3 = vmul.f32 %v63_v2, %v33_v1 }
  0x15   :  { %v44_v4 = vsel %vm43_vm1, %v41_v3, 0.0 }
  0x16   :  { %45 = vadd.xlane.f32.xlu0 %v44_v4 }
  0x19   :  { %v42_v5 = vld [vmem:[#allocation2] sm:$0xff] }
  0xa3   :  { %v46_v6 = vpop.xlane.xlu0 %45 }
  0xa4   :  { %v47_v7 = vadd.f32 %v46_v6, %v42_v5 }
  0xa6   :  { %49 = vst.msk [vmem:[#allocation2] sm:$0xff] %vm31_vm0, %v47_v7 }
  0xad   :  { %v53_v9 = vld [vmem:[#allocation2] sm:$0xff] }
  0xae   :  { %v56_v10 = vadd.f32 %v55_v8, %v53_v9 }
  0xb0   :  { %57 = vst.msk [vmem:[%s139_s3] sm:$0xff] %vm31_vm0, %v56_v10 }
  0xb1   :  { %62 = vsyncpa [#allocation5], 1 }

</bundles_post_ra>
